<compile_context>
chip_gen: v5e
topology: v5e:2x2
jax: 0.10.0
libtpu: 0.0.40
codegen_flags: <defaults>
</compile_context>

<pallas_src>
import math

import jax
import jax.numpy as jnp
from jax import lax
from jax.experimental import pallas as pl
from jax.experimental.pallas import tpu as pltpu


_LANE = 128
_CHUNK_M = 64            # rows per register-blocked inner step (8 vregs / coord slab)
_MAX_TILE_M = 1024       # rows per grid block: (3, 1024, 128) f32 = 1.5 MiB per input
_MIN_KERNEL_POINTS = 8192  # below this, plain jnp (XLA fusion) is strictly faster


def _round_up(x: int, m: int) -> int:
    return -(-x // m) * m


def _npe_kernel(gt_ref, pred_ref, out_ref, acc_ref):
    """Accumulates sum(err) over one lane-dense (D, TILE_M, 128) block."""
    t = pl.program_id(1)

    @pl.when(t == 0)
    def _init():
        acc_ref[...] = jnp.zeros_like(acc_ref)

    d = gt_ref.shape[0]
    n_chunks = gt_ref.shape[1] // _CHUNK_M

    def chunk_body(i, carry):
        off = pl.multiple_of(i * _CHUNK_M, _CHUNK_M)
        # Coordinate 0 slabs (dense (CHUNK_M, 128) vregs).
        g = gt_ref[0, pl.ds(off, _CHUNK_M), :].astype(jnp.float32)
        p = pred_ref[0, pl.ds(off, _CHUNK_M), :].astype(jnp.float32)
        diff = g - p
        d2 = diff * diff
        g2 = g * g
        # Remaining coordinates: tiny static unroll (D is 3 for positions).
        for c in range(1, d):
            g = gt_ref[c, pl.ds(off, _CHUNK_M), :].astype(jnp.float32)
            p = pred_ref[c, pl.ds(off, _CHUNK_M), :].astype(jnp.float32)
            diff = g - p
            d2 = d2 + diff * diff
            g2 = g2 + g * g
        den = jnp.sqrt(g2) + jnp.float32(1e-7)
        inv = pl.reciprocal(den, approx=True)            # EUP (free slot)
        inv = inv * (jnp.float32(2.0) - den * inv)       # one Newton step -> f32 accuracy
        acc_ref[...] += jnp.sqrt(d2) * inv               # dense VPU accumulate
        return carry

    # fori_loop (not a Python for) bounds live ranges so the per-chunk chain
    # stays in vregs instead of spilling whole-tile temporaries through VMEM.
    lax.fori_loop(0, n_chunks, chunk_body, 0)

    @pl.when(t == pl.num_programs(1) - 1)
    def _finalize():
        # Single cross-lane/sublane reduce per split; padded lanes are exact zeros.
        out_ref[0, 0] = jnp.sum(acc_ref[...])


def normalized_position_error(gt: jax.Array, pred: jax.Array, *,
                              min_kernel_points: int = _MIN_KERNEL_POINTS,
                              max_tile_m: int = _MAX_TILE_M) -> jax.Array:
    """Pallas equivalent of NormalizedPositionError().forward(gt, pred)."""
    assert gt.shape == pred.shape, (gt.shape, pred.shape)
    assert max_tile_m % _CHUNK_M == 0
    d = gt.shape[-1]
    n = int(math.prod(gt.shape[:-1]))  # prod(()) == 1 handles 1-D inputs

    if n < min_kernel_points or d == 0:
        # Small-N fast path: kernel launch + relayout overhead dominates; let XLA fuse.
        d2 = jnp.sum(jnp.square(gt - pred), axis=-1)
        g2 = jnp.sum(jnp.square(gt), axis=-1)
        return jnp.mean(jnp.sqrt(d2) / (jnp.sqrt(g2) + 1e-7))

    # ---- tiling -------------------------------------------------------------
    m128 = -(-n // _LANE)                                  # rows of 128 points
    n_splits = 2 if m128 >= 2 * _CHUNK_M else 1            # 2 TCs on v7x; harmless elsewhere
    rows_per_split = _round_up(-(-m128 // n_splits), _CHUNK_M)
    tiles_per_split = -(-rows_per_split // max_tile_m)
    tile_m = _round_up(-(-rows_per_split // tiles_per_split), _CHUNK_M)
    m_total = n_splits * tiles_per_split * tile_m
    n_total = m_total * _LANE

    # ---- relayout: (..., D) -> (D, m_total, 128) lane-dense -----------------
    # TODO(synk): producer should emit (D, N) directly; here transpose + pad are
    # adjacent copy-like ops so XLA fuses them into one relayout pass per array.
    def relayout(x):
        xt = jnp.transpose(x.reshape(n, d))                   # (D, N)
        xt = jnp.pad(xt, ((0, 0), (0, n_total - n)))          # zero rows -> err == 0
        return xt.reshape(d, m_total, _LANE)                  # free (contiguous)

    gt3 = relayout(gt)
    pred3 = relayout(pred)

    in_map = lambda s, t: (0, s * tiles_per_split + t, 0)
    itemsize = jnp.dtype(gt.dtype).itemsize

    partials = pl.pallas_call(
        _npe_kernel,
        out_shape=jax.ShapeDtypeStruct((n_splits, 1), jnp.float32),
        grid=(n_splits, tiles_per_split),
        in_specs=[
            pl.BlockSpec((d, tile_m, _LANE), in_map),
            pl.BlockSpec((d, tile_m, _LANE), in_map),
        ],
        out_specs=pl.BlockSpec((1, 1), lambda s, t: (s, 0),
                               memory_space=pltpu.SMEM),
        scratch_shapes=[pltpu.VMEM((_CHUNK_M, _LANE), jnp.float32)],
        compiler_params=pltpu.CompilerParams(
            dimension_semantics=("parallel", "arbitrary"),
            vmem_limit_bytes=32 * 1024 * 1024,
        ),
        cost_estimate=pl.CostEstimate(
            flops=(6 * d + 10) * n_total,
            transcendentals=3 * n_total,
            bytes_accessed=2 * d * n_total * itemsize + 4 * n_splits,
        ),
    )(gt3, pred3)

    # Per-split partial sums -> mean over the true (unpadded) N.
    return jnp.sum(partials) / jnp.float32(n)


def _reference(gt, pred):
    l2 = jnp.linalg.norm(gt - pred, ord=2, axis=-1)
    return jnp.mean(l2 / (jnp.linalg.norm(gt, ord=2, axis=-1) + 1e-07))


if __name__ == "__main__":
    key = jax.random.PRNGKey(0)
    k1, k2, k3, k4, k5, k6 = jax.random.split(key, 6)

    # 1) Typical tiny object-pose batch (batch=2, points=8, coords=3),
    #    forced through the Pallas kernel (exercises the zero-padding path).
    gt = jax.random.normal(k1, (2, 8, 3), dtype=jnp.float32)
    pred = gt + 0.05 * jax.random.normal(k2, (2, 8, 3), dtype=jnp.float32)
    out = normalized_position_error(gt, pred, min_kernel_points=0)
    jax.block_until_ready(out)
    ref = _reference(gt, pred)
    assert jnp.allclose(out, ref, rtol=2e-5, atol=1e-6), (out, ref)

    # Same inputs through the small-N jnp fast path (default threshold).
    out_fast = normalized_position_error(gt, pred)
    jax.block_until_ready(out_fast)
    assert jnp.allclose(out_fast, ref, rtol=2e-5, atol=1e-6), (out_fast, ref)

    # 2) Non-128-multiple point count, forced kernel path.
    gt_b = jax.random.normal(k3, (3, 50, 3), dtype=jnp.float32)
    pred_b = gt_b + 0.1 * jax.random.normal(k4, (3, 50, 3), dtype=jnp.float32)
    out_b = normalized_position_error(gt_b, pred_b, min_kernel_points=0)
    jax.block_until_ready(out_b)
    ref_b = _reference(gt_b, pred_b)
    assert jnp.allclose(out_b, ref_b, rtol=2e-5, atol=1e-6), (out_b, ref_b)

    # 3) Larger case (still small): exercises the 2-way split, multi-tile
    #    accumulation over the reduction grid axis, and the register-blocked
    #    inner loop (jitted wrapper so transpose+pad fuse).
    gt_c = jax.random.normal(k5, (2, 80000, 3), dtype=jnp.float32)
    pred_c = gt_c + 0.05 * jax.random.normal(k6, (2, 80000, 3), dtype=jnp.float32)
    jitted = jax.jit(normalized_position_error,
                     static_argnames=("min_kernel_points", "max_tile_m"))
    out_c = jitted(gt_c, pred_c, max_tile_m=128)   # forces tiles_per_split > 1
    jax.block_until_ready(out_c)
    ref_c = _reference(gt_c, pred_c)
    assert jnp.allclose(out_c, ref_c, rtol=1e-4, atol=1e-6), (out_c, ref_c)

    print("KERNEL_OK")
</pallas_src>

<mosaic_0001>
module attributes {stable_mosaic.version = 11 : i64} {
  func.func @_npe_kernel(%arg0: i32, %arg1: i32, %arg2: memref<3x64x128xf32, #tpu.memory_space<vmem>>, %arg3: memref<3x64x128xf32, #tpu.memory_space<vmem>>, %arg4: memref<1x1xf32, #tpu.memory_space<smem>>, %arg5: memref<64x128xf32, #tpu.memory_space<vmem>>) attributes {dimension_semantics = [#tpu.dimension_semantics<parallel>, #tpu.dimension_semantics<arbitrary>], iteration_bounds = array<i64: 1, 1>, scalar_prefetch = 0 : i64, scratch_operands = 1 : i64, tpu.core_type = #tpu.core_type<tc>, window_params = [{transform_indices = @transform_0, window_bounds = array<i64: 3, 64, 128>}, {transform_indices = @transform_1, window_bounds = array<i64: 3, 64, 128>}, {transform_indices = @transform_2, window_bounds = array<i64: 1, 1>}]} {
    %c0_i32 = arith.constant 0 : i32
    %0 = arith.cmpi eq, %arg1, %c0_i32 : i32
    %1 = arith.extui %0 : i1 to i32
    %c0_i32_0 = arith.constant 0 : i32
    %2 = arith.cmpi ne, %1, %c0_i32_0 : i32
    scf.if %2 {
      %cst_18 = arith.constant 0.000000e+00 : f32
      %52 = vector.broadcast %cst_18 : f32 to vector<64x128xf32>
      %c0_19 = arith.constant 0 : index
      %c0_20 = arith.constant 0 : index
      %53 = vector.load %arg5[%c0_19, %c0_20] : memref<64x128xf32, #tpu.memory_space<vmem>>, vector<64x128xf32>
      tpu.vector_store %arg5[%c0_19, %c0_20], %52 {strides = array<i32>} : memref<64x128xf32, #tpu.memory_space<vmem>>, vector<64x128xf32>,
    } else {
    }
    %c0_i32_1 = arith.constant 0 : i32
    %c64_i32 = arith.constant 64 : i32
    %3 = arith.muli %c0_i32_1, %c64_i32 : i32
    %4 = tpu.assume_multiple %3, 64 : i32
    %c0 = arith.constant 0 : index
    %5 = arith.index_cast %4 : i32 to index
    %c0_2 = arith.constant 0 : index
    %6 = vector.load %arg2[%c0, %5, %c0_2] : memref<3x64x128xf32, #tpu.memory_space<vmem>>, vector<1x64x128xf32>
    %7 = vector.shape_cast %6 : vector<1x64x128xf32> to vector<64x128xf32>
    %c0_3 = arith.constant 0 : index
    %8 = arith.index_cast %4 : i32 to index
    %c0_4 = arith.constant 0 : index
    %9 = vector.load %arg3[%c0_3, %8, %c0_4] : memref<3x64x128xf32, #tpu.memory_space<vmem>>, vector<1x64x128xf32>
    %10 = vector.shape_cast %9 : vector<1x64x128xf32> to vector<64x128xf32>
    %11 = arith.subf %7, %10 : vector<64x128xf32>
    %12 = arith.mulf %11, %11 : vector<64x128xf32>
    %13 = arith.mulf %7, %7 : vector<64x128xf32>
    %c1 = arith.constant 1 : index
    %14 = arith.index_cast %4 : i32 to index
    %c0_5 = arith.constant 0 : index
    %15 = vector.load %arg2[%c1, %14, %c0_5] : memref<3x64x128xf32, #tpu.memory_space<vmem>>, vector<1x64x128xf32>
    %16 = vector.shape_cast %15 : vector<1x64x128xf32> to vector<64x128xf32>
    %c1_6 = arith.constant 1 : index
    %17 = arith.index_cast %4 : i32 to index
    %c0_7 = arith.constant 0 : index
    %18 = vector.load %arg3[%c1_6, %17, %c0_7] : memref<3x64x128xf32, #tpu.memory_space<vmem>>, vector<1x64x128xf32>
    %19 = vector.shape_cast %18 : vector<1x64x128xf32> to vector<64x128xf32>
    %20 = arith.subf %16, %19 : vector<64x128xf32>
    %21 = arith.mulf %20, %20 : vector<64x128xf32>
    %22 = arith.addf %12, %21 : vector<64x128xf32>
    %23 = arith.mulf %16, %16 : vector<64x128xf32>
    %24 = arith.addf %13, %23 : vector<64x128xf32>
    %c2 = arith.constant 2 : index
    %25 = arith.index_cast %4 : i32 to index
    %c0_8 = arith.constant 0 : index
    %26 = vector.load %arg2[%c2, %25, %c0_8] : memref<3x64x128xf32, #tpu.memory_space<vmem>>, vector<1x64x128xf32>
    %27 = vector.shape_cast %26 : vector<1x64x128xf32> to vector<64x128xf32>
    %c2_9 = arith.constant 2 : index
    %28 = arith.index_cast %4 : i32 to index
    %c0_10 = arith.constant 0 : index
    %29 = vector.load %arg3[%c2_9, %28, %c0_10] : memref<3x64x128xf32, #tpu.memory_space<vmem>>, vector<1x64x128xf32>
    %30 = vector.shape_cast %29 : vector<1x64x128xf32> to vector<64x128xf32>
    %31 = arith.subf %27, %30 : vector<64x128xf32>
    %32 = arith.mulf %31, %31 : vector<64x128xf32>
    %33 = arith.addf %22, %32 : vector<64x128xf32>
    %34 = arith.mulf %27, %27 : vector<64x128xf32>
    %35 = arith.addf %24, %34 : vector<64x128xf32>
    %36 = math.sqrt %35 : vector<64x128xf32>
    %cst = arith.constant 1.000000e-07 : f32
    %37 = vector.broadcast %cst : f32 to vector<64x128xf32>
    %38 = arith.addf %36, %37 : vector<64x128xf32>
    %39 = tpu.reciprocal %38 {approx = true} : vector<64x128xf32> -> vector<64x128xf32>
    %40 = arith.mulf %38, %39 : vector<64x128xf32>
    %cst_11 = arith.constant 2.000000e+00 : f32
    %41 = vector.broadcast %cst_11 : f32 to vector<64x128xf32>
    %42 = arith.subf %41, %40 : vector<64x128xf32>
    %43 = arith.mulf %39, %42 : vector<64x128xf32>
    %c0_12 = arith.constant 0 : index
    %c0_13 = arith.constant 0 : index
    %44 = vector.load %arg5[%c0_12, %c0_13] : memref<64x128xf32, #tpu.memory_space<vmem>>, vector<64x128xf32>
    %45 = math.sqrt %33 : vector<64x128xf32>
    %46 = arith.mulf %45, %43 : vector<64x128xf32>
    %47 = arith.addf %44, %46 : vector<64x128xf32>
    %c0_14 = arith.constant 0 : index
    %c0_15 = arith.constant 0 : index
    %48 = vector.load %arg5[%c0_14, %c0_15] : memref<64x128xf32, #tpu.memory_space<vmem>>, vector<64x128xf32>
    tpu.vector_store %arg5[%c0_14, %c0_15], %47 {strides = array<i32>} : memref<64x128xf32, #tpu.memory_space<vmem>>, vector<64x128xf32>,
    %c1_i32 = arith.constant 1 : i32
    %c0_i32_16 = arith.constant 0 : i32
    %49 = arith.cmpi eq, %arg1, %c0_i32_16 : i32
    %50 = arith.extui %49 : i1 to i32
    %c0_i32_17 = arith.constant 0 : i32
    %51 = arith.cmpi ne, %50, %c0_i32_17 : i32
    scf.if %51 {
      %c0_18 = arith.constant 0 : index
      %c0_19 = arith.constant 0 : index
      %52 = vector.load %arg5[%c0_18, %c0_19] : memref<64x128xf32, #tpu.memory_space<vmem>>, vector<64x128xf32>
      %53 = vector.shape_cast %52 : vector<64x128xf32> to vector<1x64x128xf32>
      %cst_20 = arith.constant dense<0.000000e+00> : vector<1xf32>
      %54 = vector.multi_reduction <add>, %53, %cst_20 [1, 2] : vector<1x64x128xf32> to vector<1xf32>
      %55 = vector.shape_cast %54 : vector<1xf32> to vector<1x1x1xf32>
      %56 = vector.extract %55[0, 0, 0] : f32 from vector<1x1x1xf32>
      %c0_21 = arith.constant 0 : index
      %c0_22 = arith.constant 0 : index
      %57 = memref.load %arg4[%c0_21, %c0_22] : memref<1x1xf32, #tpu.memory_space<smem>>
      memref.store %56, %arg4[%c0_21, %c0_22] : memref<1x1xf32, #tpu.memory_space<smem>>
    } else {
    }
    return
  }
  func.func @transform_0(%arg0: i32, %arg1: i32) -> (i32, i32, i32) {
    %c1_i32 = arith.constant 1 : i32
    %0 = arith.muli %arg0, %c1_i32 : i32
    %1 = arith.addi %0, %arg1 : i32
    %c0_i32 = arith.constant 0 : i32
    %c0_i32_0 = arith.constant 0 : i32
    %c0_i32_1 = arith.constant 0 : i32
    return %c0_i32, %1, %c0_i32_0 : i32, i32, i32
  }
  func.func @transform_1(%arg0: i32, %arg1: i32) -> (i32, i32, i32) {
    %c1_i32 = arith.constant 1 : i32
    %0 = arith.muli %arg0, %c1_i32 : i32
    %1 = arith.addi %0, %arg1 : i32
    %c0_i32 = arith.constant 0 : i32
    %c0_i32_0 = arith.constant 0 : i32
    %c0_i32_1 = arith.constant 0 : i32
    return %c0_i32, %1, %c0_i32_0 : i32, i32, i32
  }
  func.func @transform_2(%arg0: i32, %arg1: i32) -> (i32, i32) {
    %c0_i32 = arith.constant 0 : i32
    %c0_i32_0 = arith.constant 0 : i32
    return %arg0, %c0_i32 : i32, i32
  }
}

</mosaic_0001>

<bundles_post_ra>
// kernel: tpu_custom_call.1
= control target key start
LH: loop header
LB: loop body
LE: loop exit
PB: predicated region body
PF: predicated region fallthrough
CT: control target
= control target key end

     0   :  { %7 = vsyncpa [#allocation4], 0  ;;  %s1025_s0 = inlined_call_operand.hbm [shape: f32[3,64,128], index: 0, kind: input, shape index: {}]   ;;  %s1026_s1 = inlined_call_operand.hbm [shape: f32[3,64,128], index: 1, kind: input, shape index: {}]   ;;  %s1027_s2 = inlined_call_operand.hbm [shape: f32[1,1], index: 2, kind: output, shape index: {}]  }
   0x1   :  { %8 = vsyncpa [#allocation7], 0 }
   0x2   :  { %9 = vsyncpa [#allocation5], 0  ;;  %s18_s11 = sshll.u32 %s1025_s0, 4  ;;  %s661_s12 = smov [#allocation3]   ;;  %s19_s11 = int_to_ptr.hbm [resolvable:$true] %s18_s11 }
   0x3   :  { %s20_s13 = sshll.u32 %s661_s12, 4  ;;  %s35_s16 = sshll.u32 %s1026_s1, 4  ;;  %s21_s13 = int_to_ptr.vmem [resolvable:$true] %s20_s13  ;;  %s36_s16 = int_to_ptr.hbm [resolvable:$true] %s35_s16 }
   0x4   :  { %s662_s17 = smov 128   ;;  %s663_s18 = smov 8  }
   0x5   :  { %26 = dma.hbm_to_vmem [thread:$0]  %s19_s11, 3072, %s21_s13, [#allocation4], %s662_s17, %s662_s17, %s663_s18  }
   0x6   :  { %s664_s19 = smov [#allocation6]  }
   0x7   :  { %s37_s20 = sshll.u32 %s664_s19, 4  ;;  %s38_s20 = int_to_ptr.vmem [resolvable:$true] %s37_s20 }
   0x8   :  { %43 = dma.hbm_to_vmem [thread:$0]  %s36_s16, 3072, %s38_s20, [#allocation7], %s662_s17, %s662_s17, %s663_s18  }
   0x9   :  { %655 = dma.done.wait [#allocation4], 3072  }
   0xa   :  { %656 = vsyncadd [#allocation4], 4294964224 }
   0xb   :  { %657 = dma.done.wait [#allocation7], 3072  }
   0xc   :  { %658 = vsyncadd [#allocation7], 4294964224  ;;  %v68_v0 = vld [vmem:[#allocation3] sm:$0xff]  ;;  %v69_v1 = vld [vmem:[#allocation3 + $0x8] sm:$0xff]  ;;  %s524_s21 = sshll.u32 %s1027_s2, 4  ;;  %s665_s23 = smov [#allocation8]   ;;  %s525_s21 = int_to_ptr.hbm [resolvable:$true] %s524_s21 }
   0xd   :  { %v70_v2 = vld [vmem:[#allocation3 + $0x10] sm:$0xff]  ;;  %v71_v3 = vld [vmem:[#allocation3 + $0x18] sm:$0xff]  ;;  %v72_v4 = vld [vmem:[#allocation3 + $0x20] sm:$0xff]  ;;  %v687_v17 = vmul.f32 %v68_v0, %v68_v0  ;;  %v689_v18 = vmul.f32 %v69_v1, %v69_v1 }
   0xe   :  { %v76_v5 = vld [vmem:[#allocation6] sm:$0xff]  ;;  %v77_v6 = vld [vmem:[#allocation6 + $0x8] sm:$0xff]  ;;  %v78_v7 = vld [vmem:[#allocation6 + $0x10] sm:$0xff]  ;;  %v691_v24 = vmul.f32 %v70_v2, %v70_v2  ;;  %v693_v27 = vmul.f32 %v71_v3, %v71_v3  ;;  %v695_v28 = vmul.f32 %v72_v4, %v72_v4 }
   0xf   :  { %v79_v8 = vld [vmem:[#allocation6 + $0x18] sm:$0xff]  ;;  %v80_v9 = vld [vmem:[#allocation6 + $0x20] sm:$0xff]  ;;  %v73_v10 = vld [vmem:[#allocation3 + $0x28] sm:$0xff]  ;;  %v84_v15 = vsub.f32 %v68_v0, %v76_v5  ;;  %v85_v16 = vsub.f32 %v69_v1, %v77_v6  ;;  %v86_v21 = vsub.f32 %v70_v2, %v78_v7 }
  0x10   :  { %v74_v11 = vld [vmem:[#allocation3 + $0x30] sm:$0xff]  ;;  %v81_v12 = vld [vmem:[#allocation6 + $0x28] sm:$0xff]  ;;  %v75_v13 = vld [vmem:[#allocation3 + $0x38] sm:$0xff]  ;;  %v87_v22 = vsub.f32 %v71_v3, %v79_v8  ;;  %v88_v23 = vsub.f32 %v72_v4, %v80_v9  ;;  %v697_v29 = vmul.f32 %v73_v10, %v73_v10 }
  0x11   :  { %v82_v14 = vld [vmem:[#allocation6 + $0x30] sm:$0xff]  ;;  %v119_v19 = vld [vmem:[#allocation6 + $0x40] sm:$0xff]  ;;  %v83_v20 = vld [vmem:[#allocation6 + $0x38] sm:$0xff]  ;;  %v89_v26 = vsub.f32 %v73_v10, %v81_v12  ;;  %v699_v34 = vmul.f32 %v74_v11, %v74_v11  ;;  %v701_v35 = vmul.f32 %v75_v13, %v75_v13  ;;  %v92_v41 = vmul.f32 %v84_v15, %v84_v15 }
  0x12   :  { %v120_v25 = vld [vmem:[#allocation6 + $0x48] sm:$0xff]  ;;  %v110_v30 = vld [vmem:[#allocation3 + $0x40] sm:$0xff]  ;;  %v121_v32 = vld [vmem:[#allocation6 + $0x50] sm:$0xff]  ;;  %v90_v33 = vsub.f32 %v74_v11, %v82_v14  ;;  %v91_v40 = vsub.f32 %v75_v13, %v83_v20  ;;  %v93_v42 = vmul.f32 %v85_v16, %v85_v16  ;;  %v94_v47 = vmul.f32 %v86_v21, %v86_v21 }
  0x13   :  { %v111_v31 = vld [vmem:[#allocation3 + $0x48] sm:$0xff]  ;;  %v122_v36 = vld [vmem:[#allocation6 + $0x58] sm:$0xff]  ;;  %v123_v37 = vld [vmem:[#allocation6 + $0x60] sm:$0xff]  ;;  %v127_v39 = vsub.f32 %v110_v30, %v119_v19  ;;  %v703_v48 = vmul.f32 %v87_v22, %v87_v22  ;;  %v705_v49 = vmul.f32 %v88_v23, %v88_v23  ;;  %v707_v54 = vmul.f32 %v89_v26, %v89_v26 }
  0x14   :  { %v124_v38 = vld [vmem:[#allocation6 + $0x68] sm:$0xff]  ;;  %v112_v43 = vld [vmem:[#allocation3 + $0x50] sm:$0xff]  ;;  %v126_v45 = vld [vmem:[#allocation6 + $0x78] sm:$0xff]  ;;  %v128_v46 = vsub.f32 %v111_v31, %v120_v25  ;;  %v709_v60 = vmul.f32 %v90_v33, %v90_v33  ;;  %v151_v1 = vmul.f32 %v110_v30, %v110_v30  ;;  %v152_v2 = vmul.f32 %v111_v31, %v111_v31 }
  0x15   :  { %v125_v44 = vld [vmem:[#allocation6 + $0x70] sm:$0xff]  ;;  %v113_v50 = vld [vmem:[#allocation3 + $0x58] sm:$0xff]  ;;  %v114_v51 = vld [vmem:[#allocation3 + $0x60] sm:$0xff]  ;;  %v129_v53 = vsub.f32 %v112_v43, %v121_v32  ;;  %v135_v63 = vmul.f32 %v127_v39, %v127_v39  ;;  %v153_v3 = vmul.f32 %v112_v43, %v112_v43  ;;  %v711_v4 = vmul.f32 %v91_v40, %v91_v40 }
  0x16   :  { %v115_v52 = vld [vmem:[#allocation3 + $0x68] sm:$0xff]  ;;  %v116_v55 = vld [vmem:[#allocation3 + $0x70] sm:$0xff]  ;;  %v117_v56 = vld [vmem:[#allocation3 + $0x78] sm:$0xff]  ;;  %v130_v57 = vsub.f32 %v113_v50, %v122_v36  ;;  %v131_v58 = vsub.f32 %v114_v51, %v123_v37  ;;  %v136_v0 = vmul.f32 %v128_v46, %v128_v46  ;;  %v154_v6 = vmul.f32 %v113_v50, %v113_v50 }
  0x17   :  { %v132_v59 = vsub.f32 %v115_v52, %v124_v38  ;;  %v133_v61 = vsub.f32 %v116_v55, %v125_v44  ;;  %v134_v62 = vsub.f32 %v117_v56, %v126_v45  ;;  %v137_v5 = vmul.f32 %v129_v53, %v129_v53  ;;  %v169_v12 = vld [vmem:[#allocation3 + $0x80] sm:$0xff]  ;;  %v170_v19 = vld [vmem:[#allocation3 + $0x88] sm:$0xff]  ;;  %v171_v20 = vld [vmem:[#allocation3 + $0x90] sm:$0xff] }
  0x18   :  { %v155_v7 = vmul.f32 %v114_v51, %v114_v51  ;;  %v138_v8 = vmul.f32 %v130_v57, %v130_v57  ;;  %v139_v9 = vmul.f32 %v131_v58, %v131_v58  ;;  %v156_v11 = vmul.f32 %v115_v52, %v115_v52  ;;  %v172_v21 = vld [vmem:[#allocation3 + $0x98] sm:$0xff]  ;;  %v173_v30 = vld [vmem:[#allocation3 + $0xa0] sm:$0xff]  ;;  %v174_v31 = vld [vmem:[#allocation3 + $0xa8] sm:$0xff] }
  0x19   :  { %v140_v10 = vmul.f32 %v132_v59, %v132_v59  ;;  %v141_v13 = vmul.f32 %v133_v61, %v133_v61  ;;  %v142_v14 = vmul.f32 %v134_v62, %v134_v62  ;;  %v713_v15 = vadd.f32 %v135_v63, %v92_v41  ;;  %v175_v38 = vld [vmem:[#allocation3 + $0xb0] sm:$0xff]  ;;  %v176_v39 = vld [vmem:[#allocation3 + $0xb8] sm:$0xff]  ;;  %v178_v40 = vld [vmem:[#allocation6 + $0x80] sm:$0xff] }
  0x1a   :  { %v157_v16 = vmul.f32 %v116_v55, %v116_v55  ;;  %v715_v22 = vadd.f32 %v136_v0, %v93_v42  ;;  %v159_v23 = vadd.f32 %v151_v1, %v687_v17  ;;  %v160_v25 = vadd.f32 %v152_v2, %v689_v18  ;;  %v179_v44 = vld [vmem:[#allocation6 + $0x88] sm:$0xff]  ;;  %v181_v53 = vld [vmem:[#allocation6 + $0x98] sm:$0xff]  ;;  %v182_v55 = vld [vmem:[#allocation6 + $0xa0] sm:$0xff] }
  0x1b   :  { %v161_v26 = vadd.f32 %v153_v3, %v691_v24  ;;  %v720_v32 = vadd.f32 %v137_v5, %v94_v47  ;;  %v158_v33 = vmul.f32 %v117_v56, %v117_v56  ;;  %v162_v36 = vadd.f32 %v154_v6, %v693_v27  ;;  %v180_v47 = vld [vmem:[#allocation6 + $0x90] sm:$0xff]  ;;  %v183_v58 = vld [vmem:[#allocation6 + $0xa8] sm:$0xff]  ;;  %v185_v1 = vld [vmem:[#allocation6 + $0xb8] sm:$0xff] }
  0x1c   :  { %v163_v37 = vadd.f32 %v155_v7, %v695_v28  ;;  %v210_v41 = vmul.f32 %v169_v12, %v169_v12  ;;  %v211_v42 = vmul.f32 %v170_v19, %v170_v19  ;;  %v212_v43 = vmul.f32 %v171_v20, %v171_v20  ;;  %v184_v0 = vld [vmem:[#allocation6 + $0xb0] sm:$0xff] }
  0x1d   :  { %v213_v17 = vmul.f32 %v172_v21, %v172_v21  ;;  %v164_v18 = vadd.f32 %v156_v11, %v697_v29  ;;  %v165_v24 = vadd.f32 %v157_v16, %v699_v34  ;;  %v214_v45 = vmul.f32 %v173_v30, %v173_v30 }
  0x1e   :  { %v215_v46 = vmul.f32 %v174_v31, %v174_v31  ;;  %v216_v50 = vmul.f32 %v175_v38, %v175_v38  ;;  %v726_v51 = vadd.f32 %v210_v41, %v159_v23  ;;  %v728_v27 = vadd.f32 %v211_v42, %v160_v25 }
  0x1f   :  { %v730_v28 = vadd.f32 %v212_v43, %v161_v26  ;;  %v166_v52 = vadd.f32 %v158_v33, %v701_v35  ;;  %v186_v56 = vsub.f32 %v169_v12, %v178_v40  ;;  %v217_v57 = vmul.f32 %v176_v39, %v176_v39 }
  0x20   :  { %v733_v29 = vadd.f32 %v213_v17, %v162_v36  ;;  %v736_v34 = vadd.f32 %v138_v8, %v703_v48  ;;  %v187_v59 = vsub.f32 %v170_v19, %v179_v44  ;;  %v738_v61 = vadd.f32 %v214_v45, %v163_v37 }
  0x21   :  { %547 = vrsqrt.f32 %v726_v51  ;;  %v742_v62 = vadd.f32 %v139_v9, %v705_v49  ;;  %v188_v63 = vsub.f32 %v171_v20, %v180_v47  ;;  %v744_v35 = vadd.f32 %v215_v46, %v164_v18 }
  0x22   :  { %549 = vrsqrt.f32 %v728_v27  ;;  %v189_v2 = vsub.f32 %v172_v21, %v181_v53  ;;  %v190_v3 = vsub.f32 %v173_v30, %v182_v55  ;;  %v747_v48 = vadd.f32 %v216_v50, %v165_v24 }
  0x23   :  { %551 = vrsqrt.f32 %v730_v28  ;;  %v191_v5 = vsub.f32 %v174_v31, %v183_v58  ;;  %v194_v6 = vmul.f32 %v186_v56, %v186_v56  ;;  %v750_v7 = vadd.f32 %v217_v57, %v166_v52 }
  0x24   :  { %553 = vrsqrt.f32 %v733_v29  ;;  %v754_v49 = vadd.f32 %v140_v10, %v707_v54  ;;  %v757_v8 = vadd.f32 %v141_v13, %v709_v60  ;;  %v195_v9 = vmul.f32 %v187_v59, %v187_v59 }
  0x25   :  { %555 = vrsqrt.f32 %v738_v61  ;;  %v761_v11 = vadd.f32 %v142_v14, %v711_v4  ;;  %v763_v12 = vsub.f32 %v175_v38, %v184_v0  ;;  %v765_v16 = vsub.f32 %v176_v39, %v185_v1 }
  0x26   :  { %557 = vrsqrt.f32 %v744_v35  ;;  %v768_v20 = vmul.f32 %v188_v63, %v188_v63  ;;  %v770_v54 = vmul.f32 %v189_v2, %v189_v2  ;;  %v772_v10 = vmul.f32 %v190_v3, %v190_v3 }
  0x27   :  { %v548_v19 = vpop.eup %547  ;;  %559 = vrsqrt.f32 %v747_v48  ;;  %v775_v13 = vmul.f32 %v191_v5, %v191_v5  ;;  %v778_v4 = vadd.f32 %v194_v6, %v713_v15  ;;  %v783_v23 = vadd.f32 %v195_v9, %v715_v22 }
  0x28   :  { %v550_v60 = vpop.eup %549  ;;  %v227_v14 = vmul.f32 %v548_v19, %v726_v51  ;;  %561 = vrsqrt.f32 %v750_v7  ;;  %vm233_vm0 = vcmp.eq.f32.partialorder %v726_v51, inf  ;;  %v236_v25 = vand.u32 2147483648, %v726_v51 }
  0x29   :  { %v552_v21 = vpop.eup %551  ;;  %v239_v26 = vmul.f32 %v550_v60, %v728_v27  ;;  %vm245_vm1 = vcmp.eq.f32.partialorder %v728_v27, inf  ;;  %v248_v15 = vand.u32 2147483648, %v728_v27  ;;  %vm235_vm2 = vcmp.eq.f32.partialorder %v726_v51, 0.0 }
  0x2a   :  { %v554_v30 = vpop.eup %553  ;;  %v228_v31 = vmul.f32 %v548_v19, %v227_v14  ;;  %v251_v33 = vmul.f32 %v552_v21, %v730_v28  ;;  %v260_v22 = vand.u32 2147483648, %v730_v28  ;;  %v272_v39 = vand.u32 2147483648, %v733_v29 }
  0x2b   :  { %v556_v36 = vpop.eup %555  ;;  %v240_v37 = vmul.f32 %v550_v60, %v239_v26  ;;  %v263_v38 = vmul.f32 %v554_v30, %v733_v29  ;;  %vm247_vm3 = vcmp.eq.f32.partialorder %v728_v27, 0.0  ;;  %vm257_vm4 = vcmp.eq.f32.partialorder %v730_v28, inf }
  0x2c   :  { %v558_v40 = vpop.eup %557  ;;  %v229_v41 = vmul.f32 0.5, %v228_v31  ;;  %v252_v42 = vmul.f32 %v552_v21, %v251_v33  ;;  %v275_v43 = vmul.f32 %v556_v36, %v738_v61  ;;  %563 = vrsqrt.f32 %v778_v4 }
  0x2d   :  { %v560_v17 = vpop.eup %559  ;;  %v241_v18 = vmul.f32 0.5, %v240_v37  ;;  %v264_v24 = vmul.f32 %v554_v30, %v263_v38  ;;  %vm269_vm5 = vcmp.eq.f32.partialorder %v733_v29, inf  ;;  %v287_v44 = vmul.f32 %v558_v40, %v744_v35 }
  0x2e   :  { %565 = vrsqrt.f32 %v783_v23  ;;  %v562_v45 = vpop.eup %561  ;;  %v230_v46 = vsub.f32 1.5, %v229_v41  ;;  %v253_v47 = vmul.f32 0.5, %v252_v42  ;;  %v276_v50 = vmul.f32 %v556_v36, %v275_v43 }
  0x2f   :  { %vm281_vm6 = vcmp.eq.f32.partialorder %v738_v61, inf  ;;  %v299_v52 = vmul.f32 %v560_v17, %v747_v48  ;;  %v242_v53 = vsub.f32 1.5, %v241_v18  ;;  %vm259_vm7 = vcmp.eq.f32.partialorder %v730_v28, 0.0 }
  0x30   :  { %v265_v55 = vmul.f32 0.5, %v264_v24  ;;  %v288_v56 = vmul.f32 %v558_v40, %v287_v44  ;;  %v311_v57 = vmul.f32 %v562_v45, %v750_v7  ;;  %v231_v58 = vmul.f32 %v548_v19, %v230_v46 }
  0x31   :  { %v254_v59 = vsub.f32 1.5, %v253_v47  ;;  %vm271_vm8 = vcmp.eq.f32.partialorder %v733_v29, 0.0  ;;  %v277_v63 = vmul.f32 0.5, %v276_v50  ;;  %v300_v0 = vmul.f32 %v560_v17, %v299_v52 }
  0x32   :  { %v243_v1 = vmul.f32 %v550_v60, %v242_v53  ;;  %v266_v2 = vsub.f32 1.5, %v265_v55  ;;  %vm283_vm9 = vcmp.eq.f32.partialorder %v738_v61, 0.0  ;;  %v289_v3 = vmul.f32 0.5, %v288_v56  ;;  %v808_v6 = vpop.eup %563 }
  0x33   :  { %v312_v5 = vmul.f32 %v562_v45, %v311_v57  ;;  %v232_v9 = vmul.f32 %v231_v58, %v726_v51  ;;  %v255_v14 = vmul.f32 %v552_v21, %v254_v59  ;;  %v278_v26 = vsub.f32 1.5, %v277_v63 }
  0x34   :  { %v301_v31 = vmul.f32 0.5, %v300_v0  ;;  %v811_v33 = vpop.eup %565  ;;  %v244_v19 = vmul.f32 %v243_v1, %v728_v27  ;;  %v267_v37 = vmul.f32 %v554_v30, %v266_v2  ;;  %v290_v38 = vsub.f32 1.5, %v289_v3 }
  0x35   :  { %v313_v41 = vmul.f32 0.5, %v312_v5  ;;  %v234_v60 = vsel %vm233_vm0, %v726_v51, %v232_v9  ;;  %v256_v42 = vmul.f32 %v255_v14, %v730_v28  ;;  %v279_v43 = vmul.f32 %v556_v36, %v278_v26 }
  0x36   :  { %v302_v18 = vsub.f32 1.5, %v301_v31  ;;  %v246_v21 = vsel %vm245_vm1, %v728_v27, %v244_v19  ;;  %v268_v24 = vmul.f32 %v267_v37, %v733_v29  ;;  %v284_v44 = vand.u32 2147483648, %v738_v61 }
  0x37   :  { %v291_v46 = vmul.f32 %v558_v40, %v290_v38  ;;  %v237_v30 = vsel %vm235_vm2, %v236_v25, %v234_v60  ;;  %v280_v47 = vmul.f32 %v279_v43, %v738_v61  ;;  %vm293_vm10 = vcmp.eq.f32.partialorder %v744_v35, inf }
  0x38   :  { %v303_v36 = vmul.f32 %v560_v17, %v302_v18  ;;  %v249_v50 = vsel %vm247_vm3, %v248_v15, %v246_v21  ;;  %v258_v52 = vsel %vm257_vm4, %v730_v28, %v256_v42  ;;  %v314_v53 = vsub.f32 1.5, %v313_v41 }
  0x39   :  { %v292_v40 = vmul.f32 %v291_v46, %v744_v35  ;;  %v270_v51 = vsel %vm269_vm5, %v733_v29, %v268_v24  ;;  %vm295_vm11 = vcmp.eq.f32.partialorder %v744_v35, 0.0  ;;  %v296_v25 = vand.u32 2147483648, %v744_v35 }
  0x3a   :  { %vm305_vm12 = vcmp.eq.f32.partialorder %v747_v48, inf  ;;  %v282_v27 = vsel %vm281_vm6, %v738_v61, %v280_v47  ;;  %v304_v15 = vmul.f32 %v303_v36, %v747_v48  ;;  %v315_v17 = vmul.f32 %v562_v45, %v314_v53 }
  0x3b   :  { %v322_v55 = vadd.f32 1e-07, %v237_v30  ;;  %v261_v56 = vsel %vm259_vm7, %v260_v22, %v258_v52  ;;  %v294_v57 = vsel %vm293_vm10, %v744_v35, %v292_v40  ;;  %vm307_vm13 = vcmp.eq.f32.partialorder %v747_v48, 0.0 }
  0x3c   :  { %v323_v58 = vadd.f32 1e-07, %v249_v50  ;;  %v273_v59 = vsel %vm271_vm8, %v272_v39, %v270_v51  ;;  %v308_v63 = vand.u32 2147483648, %v747_v48  ;;  %v316_v45 = vmul.f32 %v315_v17, %v750_v7 }
  0x3d   :  { %vm317_vm14 = vcmp.eq.f32.partialorder %v750_v7, inf  ;;  %v285_v28 = vsel %vm283_vm9, %v284_v44, %v282_v27  ;;  %v320_v22 = vand.u32 2147483648, %v750_v7  ;;  %v371_v0 = vmul.f32 %v808_v6, %v778_v4 }
  0x3e   :  { %v383_v1 = vmul.f32 %v811_v33, %v783_v23  ;;  %v297_v29 = vsel %vm295_vm11, %v296_v25, %v294_v57  ;;  %v306_v39 = vsel %vm305_vm12, %v747_v48, %v304_v15  ;;  %v324_v2 = vadd.f32 1e-07, %v261_v56 }
  0x3f   :  { %567 = vrcp.f32 %v322_v55  ;;  %v325_v3 = vadd.f32 1e-07, %v273_v59  ;;  %v372_v61 = vmul.f32 %v808_v6, %v371_v0  ;;  %v200_v9 = vmul.f32 %v763_v12, %v763_v12 }
  0x40   :  { %569 = vrcp.f32 %v323_v58  ;;  %v384_v5 = vmul.f32 %v811_v33, %v383_v1  ;;  %v318_v14 = vsel %vm317_vm14, %v750_v7, %v316_v45  ;;  %vm319_vm15 = vcmp.eq.f32.partialorder %v750_v7, 0.0 }
  0x41   :  { %v326_v35 = vadd.f32 1e-07, %v285_v28  ;;  %v201_v26 = vmul.f32 %v765_v16, %v765_v16  ;;  %v882_v31 = vadd.f32 %v768_v20, %v720_v32  ;;  %v373_v19 = vmul.f32 0.5, %v372_v61 }
  0x42   :  { %v385_v37 = vmul.f32 0.5, %v384_v5  ;;  %v886_v38 = vadd.f32 %v770_v54, %v736_v34  ;;  %v309_v12 = vsel %vm307_vm13, %v308_v63, %v306_v39  ;;  %v890_v41 = vadd.f32 1e-07, %v297_v29 }
  0x43   :  { %571 = vrcp.f32 %v324_v2  ;;  %v321_v7 = vsel %vm319_vm15, %v320_v22, %v318_v14  ;;  %v374_v60 = vsub.f32 1.5, %v373_v19  ;;  %v894_v32 = vadd.f32 %v772_v10, %v742_v62 }
  0x44   :  { %573 = vrcp.f32 %v325_v3  ;;  %v386_v16 = vsub.f32 1.5, %v385_v37  ;;  %v898_v34 = vadd.f32 %v775_v13, %v754_v49  ;;  %v900_v48 = vadd.f32 1e-07, %v309_v12 }
  0x45   :  { %v568_v42 = vpop.eup %567  ;;  %575 = vrcp.f32 %v326_v35  ;;  %v903_v54 = vadd.f32 1e-07, %v321_v7  ;;  %v375_v43 = vmul.f32 %v808_v6, %v374_v60  ;;  %v909_v62 = vadd.f32 %v200_v9, %v757_v8 }
  0x46   :  { %v570_v20 = vpop.eup %569  ;;  %577 = vrsqrt.f32 %v882_v31  ;;  %v387_v18 = vmul.f32 %v811_v33, %v386_v16  ;;  %v912_v10 = vadd.f32 %v201_v26, %v761_v11  ;;  %v338_v49 = vmul.f32 %v568_v42, %v322_v55 }
  0x47   :  { %579 = vrsqrt.f32 %v886_v38  ;;  %v339_v21 = vmul.f32 %v570_v20, %v323_v58  ;;  %vm377_vm0 = vcmp.eq.f32.partialorder %v778_v4, inf  ;;  %vm379_vm1 = vcmp.eq.f32.partialorder %v778_v4, 0.0 }
  0x48   :  { %581 = vrcp.f32 %v890_v41  ;;  %v380_v8 = vand.u32 2147483648, %v778_v4  ;;  %vm389_vm2 = vcmp.eq.f32.partialorder %v783_v23, inf  ;;  %vm391_vm3 = vcmp.eq.f32.partialorder %v783_v23, 0.0 }
  0x49   :  { %v572_v13 = vpop.eup %571  ;;  %583 = vrsqrt.f32 %v894_v32  ;;  %v376_v33 = vmul.f32 %v375_v43, %v778_v4  ;;  %v388_v24 = vmul.f32 %v387_v18, %v783_v23  ;;  %v392_v44 = vand.u32 2147483648, %v783_v23 }
  0x4a   :  { %v918_v6 = vpop.eup %573  ;;  %585 = vrcp.f32 %v900_v48  ;;  %v340_v30 = vmul.f32 %v572_v13, %v324_v2  ;;  %v346_v47 = vsub.f32 2.0, %v338_v49  ;;  %v404_v36 = vand.u32 2147483648, %v882_v31 }
  0x4b   :  { %v924_v11 = vpop.eup %575  ;;  %587 = vrcp.f32 %v903_v54  ;;  %v416_v50 = vand.u32 2147483648, %v886_v38  ;;  %v347_v40 = vsub.f32 2.0, %v339_v21  ;;  %v428_v51 = vand.u32 2147483648, %v894_v32 }
  0x4c   :  { %v578_v46 = vpop.eup %577  ;;  %v440_v25 = vand.u32 2147483648, %v898_v34  ;;  %v341_v15 = vmul.f32 %v918_v6, %v325_v3  ;;  %v342_v17 = vmul.f32 %v924_v11, %v326_v35  ;;  %vm401_vm4 = vcmp.eq.f32.partialorder %v882_v31, inf }
  0x4d   :  { %v580_v52 = vpop.eup %579  ;;  %v395_v53 = vmul.f32 %v578_v46, %v882_v31  ;;  %589 = vrsqrt.f32 %v898_v34  ;;  %v378_v57 = vsel %vm377_vm0, %v778_v4, %v376_v33  ;;  %v390_v58 = vsel %vm389_vm2, %v783_v23, %v388_v24 }
  0x4e   :  { %v935_v27 = vpop.eup %581  ;;  %v407_v55 = vmul.f32 %v580_v52, %v886_v38  ;;  %vm403_vm5 = vcmp.eq.f32.partialorder %v882_v31, 0.0  ;;  %vm413_vm6 = vcmp.eq.f32.partialorder %v886_v38, inf  ;;  %591 = vrsqrt.f32 %v909_v62 }
  0x4f   :  { %v584_v56 = vpop.eup %583  ;;  %v396_v59 = vmul.f32 %v578_v46, %v395_v53  ;;  %v348_v45 = vsub.f32 2.0, %v340_v30  ;;  %v354_v28 = vmul.f32 %v568_v42, %v346_v47  ;;  %vm415_vm7 = vcmp.eq.f32.partialorder %v886_v38, 0.0 }
  0x50   :  { %v951_v63 = vpop.eup %585  ;;  %v408_v22 = vmul.f32 %v580_v52, %v407_v55  ;;  %v419_v0 = vmul.f32 %v584_v56, %v894_v32  ;;  %v343_v29 = vmul.f32 %v935_v27, %v890_v41  ;;  %v355_v39 = vmul.f32 %v570_v20, %v347_v40 }
  0x51   :  { %v955_v1 = vpop.eup %587  ;;  %v397_v2 = vmul.f32 0.5, %v396_v59  ;;  %vm425_vm8 = vcmp.eq.f32.partialorder %v894_v32, inf  ;;  %593 = vrsqrt.f32 %v912_v10  ;;  %v381_v3 = vsel %vm379_vm1, %v380_v8, %v378_v57 }
  0x52   :  { %v393_v61 = vsel %vm391_vm3, %v392_v44, %v390_v58  ;;  %v409_v5 = vmul.f32 0.5, %v408_v22  ;;  %v420_v9 = vmul.f32 %v584_v56, %v419_v0  ;;  %vm427_vm9 = vcmp.eq.f32.partialorder %v894_v32, 0.0 }
  0x53   :  { %v344_v14 = vmul.f32 %v951_v63, %v900_v48  ;;  %v349_v35 = vsub.f32 2.0, %v341_v15  ;;  %v350_v26 = vsub.f32 2.0, %v342_v17  ;;  %v398_v19 = vsub.f32 1.5, %v397_v2  ;;  %v590_v37 = vpop.eup %589 }
  0x54   :  { %v345_v12 = vmul.f32 %v955_v1, %v903_v54  ;;  %v356_v41 = vmul.f32 %v572_v13, %v348_v45  ;;  %v410_v4 = vsub.f32 1.5, %v409_v5  ;;  %v421_v7 = vmul.f32 0.5, %v420_v9  ;;  %v592_v60 = vpop.eup %591 }
  0x55   :  { %v399_v23 = vmul.f32 %v578_v46, %v398_v19  ;;  %v431_v16 = vmul.f32 %v590_v37, %v898_v34  ;;  %v466_v42 = vmul.f32 %v381_v3, %v354_v28  ;;  %v467_v20 = vmul.f32 %v393_v61, %v355_v39 }
  0x56   :  { %v351_v43 = vsub.f32 2.0, %v343_v29  ;;  %v411_v18 = vmul.f32 %v580_v52, %v410_v4  ;;  %v422_v49 = vsub.f32 1.5, %v421_v7  ;;  %vm437_vm10 = vcmp.eq.f32.partialorder %v898_v34, inf }
  0x57   :  { %v443_v48 = vmul.f32 %v592_v60, %v909_v62  ;;  %v594_v21 = vpop.eup %593  ;;  %v352_v8 = vsub.f32 2.0, %v344_v14  ;;  %v357_v54 = vmul.f32 %v918_v6, %v349_v35  ;;  %v400_v13 = vmul.f32 %v399_v23, %v882_v31 }
  0x58   :  { %v432_v33 = vmul.f32 %v590_v37, %v431_v16  ;;  %vm439_vm11 = vcmp.eq.f32.partialorder %v898_v34, 0.0  ;;  %v412_v24 = vmul.f32 %v411_v18, %v886_v38  ;;  %v423_v44 = vmul.f32 %v584_v56, %v422_v49 }
  0x59   :  { %v444_v46 = vmul.f32 %v592_v60, %v443_v48  ;;  %v455_v30 = vmul.f32 %v594_v21, %v912_v10  ;;  %v358_v47 = vmul.f32 %v924_v11, %v350_v26  ;;  %v402_v52 = vsel %vm401_vm4, %v882_v31, %v400_v13 }
  0x5a   :  { %v433_v40 = vmul.f32 0.5, %v432_v33  ;;  %v501_v53 = vadd.f32 %v467_v20, %v466_v42  ;;  %v405_v6 = vsel %vm403_vm5, %v404_v36, %v402_v52  ;;  %v414_v15 = vsel %vm413_vm6, %v886_v38, %v412_v24 }
  0x5b   :  { %v424_v17 = vmul.f32 %v423_v44, %v894_v32  ;;  %v445_v55 = vmul.f32 0.5, %v444_v46  ;;  %v417_v11 = vsel %vm415_vm7, %v416_v50, %v414_v15  ;;  %v456_v57 = vmul.f32 %v594_v21, %v455_v30 }
  0x5c   :  { %v434_v56 = vsub.f32 1.5, %v433_v40  ;;  %v468_v58 = vmul.f32 %v405_v6, %v356_v41  ;;  %v353_v59 = vsub.f32 2.0, %v345_v12  ;;  %v469_v45 = vmul.f32 %v417_v11, %v357_v54 }
  0x5d   :  { %v426_v31 = vsel %vm425_vm8, %v894_v32, %v424_v17  ;;  %v446_v36 = vsub.f32 1.5, %v445_v55  ;;  %v457_v0 = vmul.f32 0.5, %v456_v57  ;;  %v359_v38 = vmul.f32 %v935_v27, %v351_v43 }
  0x5e   :  { %v429_v28 = vsel %vm427_vm9, %v428_v51, %v426_v31  ;;  %v435_v22 = vmul.f32 %v590_v37, %v434_v56  ;;  %v502_v29 = vadd.f32 %v501_v53, %v468_v58  ;;  %vm449_vm12 = vcmp.eq.f32.partialorder %v909_v62, inf }
  0x5f   :  { %v447_v50 = vmul.f32 %v592_v60, %v446_v36  ;;  %v470_v39 = vmul.f32 %v429_v28, %v358_v47  ;;  %v452_v3 = vand.u32 2147483648, %v909_v62  ;;  %v458_v61 = vsub.f32 1.5, %v457_v0 }
  0x60   :  { %v436_v2 = vmul.f32 %v435_v22, %v898_v34  ;;  %v503_v5 = vadd.f32 %v502_v29, %v469_v45  ;;  %v360_v9 = vmul.f32 %v951_v63, %v352_v8  ;;  %vm451_vm13 = vcmp.eq.f32.partialorder %v909_v62, 0.0 }
  0x61   :  { %v448_v32 = vmul.f32 %v447_v50, %v909_v62  ;;  %v361_v51 = vmul.f32 %v955_v1, %v353_v59  ;;  %v459_v14 = vmul.f32 %v594_v21, %v458_v61  ;;  %vm461_vm14 = vcmp.eq.f32.partialorder %v912_v10, inf }
  0x62   :  { %v438_v27 = vsel %vm437_vm10, %v898_v34, %v436_v2  ;;  %v504_v35 = vadd.f32 %v503_v5, %v470_v39  ;;  %v464_v63 = vand.u32 2147483648, %v912_v10  ;;  %vm463_vm15 = vcmp.eq.f32.partialorder %v912_v10, 0.0 }
  0x63   :  { %v441_v26 = vsel %vm439_vm11, %v440_v25, %v438_v27  ;;  %v450_v19 = vsel %vm449_vm12, %v909_v62, %v448_v32  ;;  %v460_v1 = vmul.f32 %v459_v14, %v912_v10 }
  0x64   :  { %v453_v37 = vsel %vm451_vm13, %v452_v3, %v450_v19  ;;  %v471_v12 = vmul.f32 %v441_v26, %v359_v38 }
  0x65   :  { %v472_v41 = vmul.f32 %v453_v37, %v360_v9  ;;  %v462_v4 = vsel %vm461_vm14, %v912_v10, %v460_v1 }
  0x66   :  { %v505_v7 = vadd.f32 %v504_v35, %v471_v12  ;;  %v465_v60 = vsel %vm463_vm15, %v464_v63, %v462_v4 }
  0x67   :  { %v473_v23 = vmul.f32 %v465_v60, %v361_v51 }
  0x68   :  { %v506_v34 = vadd.f32 %v505_v7, %v472_v41 }
  0x6a   :  { %v507_v25 = vadd.f32 %v506_v34, %v473_v23 }
  0x6c   :  { %508 = vadd.xlane.f32.xlu0 %v507_v25 }
  0xdf   :  { %v509_v62 = vpop.xlane.xlu0 %508 }
  0xe0   :  { %v510_v16 = vrot.slane %v509_v62, 4 }
  0xe2   :  { %v511_v42 = vadd.f32 %v510_v16, %v509_v62 }
  0xe4   :  { %v512_v20 = vrot.slane %v511_v42, 2 }
  0xe6   :  { %v513_v43 = vadd.f32 %v512_v20, %v511_v42 }
  0xe8   :  { %v514_v18 = vrot.slane %v513_v43, 1 }
  0xea   :  { %v515_v49 = vadd.f32 %v514_v18, %v513_v43 }
  0xec   :  { %540 = vpush %v515_v49 }
 0x11d   :  { %s541_s22 = spop %540 }
 0x11e   :  { %518 = sst [smem:[#allocation8]] %s541_s22 }
 0x11f   :  { %527 = dma.smem_to_hbm %s665_s23, 16, %s525_s21, [#allocation5]  }
 0x120   :  { %659 = dma.done.wait [#allocation5], 16  }
 0x121   :  { %660 = vsyncadd [#allocation5], 4294967280 }
 0x122   :  { %532 = sfence }
 0x123   :  { %533 = vsyncpa [#allocation4], 1 }
 0x124   :  { %534 = vsyncpa [#allocation7], 1 }
 0x125   :  { %535 = vsyncpa [#allocation5], 1 }

</bundles_post_ra>
